<compile_context>
chip_gen: v6e
topology: v6e:2x2x1
jax: 0.10.0
libtpu: 0.0.40
codegen_flags: <defaults>
</compile_context>

<pallas_src>
import functools

import jax
import jax.numpy as jnp
from jax.experimental import pallas as pl
from jax.experimental.pallas import tpu as pltpu


# ----------------------------- hardware heuristics -----------------------------

def _device_kind() -> str:
    try:
        return jax.devices()[0].device_kind.lower()
    except Exception:
        return ""


def _bf16_act_supported() -> bool:
    # bf16 VPU/EUP exists on v6e and newer; v5e (and older) keep the f32 path.
    kind = _device_kind()
    return any(t in kind for t in ("v6", "v7"))


def _num_tensorcores_per_chip() -> int:
    # v7x exposes 2 TensorCores per chip (megacore); v5e/v6e have 1.
    return 2 if "v7" in _device_kind() else 1


def _round_up(v: int, m: int) -> int:
    return ((v + m - 1) // m) * m


def _choose_tm(n: int, num_cores: int) -> int:
    """128-aligned lane-tile size. Single step for small N, large (<=4096-lane) tiles
    for big N, and on v7x a split that gives the megacore >= 2 grid steps."""
    n128 = _round_up(n, 128)
    if num_cores > 1 and n128 >= 256 * num_cores:
        per_core = _round_up(-(-n // num_cores), 128)
        return min(per_core, 4096)
    return n128 if n128 <= 4096 else 4096


# ----------------------------------- kernel ------------------------------------

def mlp_kernel(x_ref, vecs_ref, w2t_ref, b3_ref, o_ref, *, use_bf16):
    """x_ref:(1,tm) raw inputs | vecs:(H,4)=[w1|b1|b2|w3] columns (normalizer folded
    into w1/b1) | w2t:(H,H) PyTorch (out,in) layout (bf16 on v6e/v7x) | b3:(1,1) SMEM.
    o_ref:(1,tm) lane-dense f32 output row."""
    x_row = x_ref[...]                                   # (1, tm) f32
    vecs = vecs_ref[...]                                 # (H, 4)  f32
    w1 = vecs[:, 0:1]
    b1 = vecs[:, 1:2]
    b2 = vecs[:, 2:3]
    w3 = vecs[:, 3:4]

    # Layer 1 (K=1, normalization folded in): VPU broadcast outer product, no MXU.
    pre1 = w1 * x_row + b1                               # (H, tm) f32
    if use_bf16:
        pre1 = pre1.astype(jnp.bfloat16)                 # bf16 EUP tanh (v6e/v7x)
    h1 = jnp.tanh(pre1)                                  # (H, tm)

    # Layer 2: the only real matmul -> MXU, f32 accumulate.
    if use_bf16:
        pre2 = jnp.dot(w2t_ref[...], h1,                 # bf16 x bf16 -> f32 acc
                       preferred_element_type=jnp.float32)
    else:
        pre2 = jnp.dot(w2t_ref[...], h1,                 # deterministic true-f32 path
                       preferred_element_type=jnp.float32,
                       precision=jax.lax.Precision.HIGHEST)
    pre2 = pre2 + b2                                     # (H, tm) f32
    if use_bf16:
        pre2 = pre2.astype(jnp.bfloat16)
    h2 = jnp.tanh(pre2)                                  # (H, tm)

    # Layer 3 (N=1): VPU multiply + XLU sublane reduce -> lane-dense row.
    o_ref[...] = (
        jnp.sum(w3 * h2.astype(jnp.float32), axis=0, keepdims=True) + b3_ref[0, 0]
    )                                                    # (1, tm) f32


# --------------------------------- host wrapper ---------------------------------

def improved_net_forward(x_raw, kparams, *, tm=None, use_bf16=False, num_cores=1):
    """x_raw: (N,1) or (N,) raw (un-normalized) f32 inputs.
    kparams: kernel-layout params from prepare_kernel_params()."""
    x_flat = jnp.asarray(x_raw, jnp.float32).reshape(-1)
    N = int(x_flat.shape[0])
    H = kparams["vecs"].shape[0]

    if tm is None:
        tm = _choose_tm(N, num_cores)
    else:
        tm = _round_up(int(tm), 128)        # keep output stores unmasked lane-dense

    pad = _round_up(N, tm) - N
    if pad:
        x_flat = jnp.pad(x_flat, (0, pad))  # padded tail rows are sliced off below
    G = x_flat.shape[0] // tm
    x_slab = x_flat.reshape(G, 1, tm)       # lane-dense input slabs

    kernel = functools.partial(mlp_kernel, use_bf16=use_bf16)

    out = pl.pallas_call(
        kernel,
        out_shape=jax.ShapeDtypeStruct((G, 1, tm), jnp.float32),
        grid_spec=pltpu.PrefetchScalarGridSpec(
            num_scalar_prefetch=0,
            grid=(G,),
            in_specs=[
                pl.BlockSpec((None, 1, tm), lambda i: (i, 0, 0)),    # x slab
                pl.BlockSpec((H, 4), lambda i: (0, 0)),              # packed w1|b1|b2|w3
                pl.BlockSpec((H, H), lambda i: (0, 0)),              # w2t (out, in)
                pl.BlockSpec(memory_space=pltpu.MemorySpace.SMEM),   # b3 scalar
            ],
            out_specs=pl.BlockSpec((None, 1, tm), lambda i: (i, 0, 0)),
        ),
        compiler_params=pltpu.CompilerParams(
            dimension_semantics=("parallel",),   # row axis shards across TCs on v7x
        ),
    )(x_slab, kparams["vecs"], kparams["w2t"], kparams["b3"])

    return out.reshape(-1)[:N].reshape(N, 1)


# ------------------------------ params / reference ------------------------------

def init_torch_params(key, hidden=64):
    """Deterministic init mimicking torch.nn.Linear defaults (U(+/-1/sqrt(fan_in))),
    stored in PyTorch layout: weight (out, in), bias (out,)."""
    ks = jax.random.split(key, 6)

    def unif(k, shape, fan_in):
        b = 1.0 / jnp.sqrt(jnp.float32(fan_in))
        return jax.random.uniform(k, shape, jnp.float32, -b, b)

    return {
        "W1": unif(ks[0], (hidden, 1), 1),
        "b1": unif(ks[1], (hidden,), 1),
        "W2": unif(ks[2], (hidden, hidden), hidden),
        "b2": unif(ks[3], (hidden,), hidden),
        "W3": unif(ks[4], (1, hidden), hidden),
        "b3": unif(ks[5], (1,), hidden),
    }


def prepare_kernel_params(tp, mean, std, *, use_bf16=False):
    """Kernel layouts + exact fold of the Normalizer into layer 1:
    W1 @ ((x-mean)/std) + b1 == (W1/std) @ x + (b1 - W1*mean/std).
    Packs the four (H,1) vectors into one (H,4) operand; hoists the bf16 cast of the
    loop-invariant (H,H) weight to the host when the bf16 path is enabled."""
    H = tp["W1"].shape[0]
    mean = jnp.float32(mean)
    std = jnp.float32(std)
    w1_raw = tp["W1"].reshape(H, 1)
    w1 = w1_raw / std
    b1 = tp["b1"].reshape(H, 1) - w1 * mean
    b2 = tp["b2"].reshape(H, 1)
    w3 = tp["W3"].reshape(H, 1)
    vecs = jnp.concatenate([w1, b1, b2, w3], axis=1).astype(jnp.float32)   # (H, 4)
    w2t = tp["W2"].astype(jnp.bfloat16) if use_bf16 else tp["W2"]          # (H, H)
    return {"vecs": vecs, "w2t": w2t, "b3": tp["b3"].reshape(1, 1)}


def reference_forward(x_raw, tp, mean, std):
    """Pure-JAX reference with the original module semantics (normalize, then MLP)."""
    hp = jax.lax.Precision.HIGHEST
    x = (x_raw - mean) / std
    h1 = jnp.tanh(jnp.dot(x, tp["W1"].T, precision=hp) + tp["b1"])
    h2 = jnp.tanh(jnp.dot(h1, tp["W2"].T, precision=hp) + tp["b2"])
    return jnp.dot(h2, tp["W3"].T, precision=hp) + tp["b3"]


# ------------------------------------- main -------------------------------------

if __name__ == "__main__":
    key = jax.random.PRNGKey(0)
    tp = init_torch_params(key, hidden=64)

    use_bf16 = _bf16_act_supported()          # bf16 activations on v6e/v7x only
    num_cores = _num_tensorcores_per_chip()   # 2 on v7x (megacore), else 1

    # Input like the original script (linspace in [-2pi, 2pi]) at a small size.
    N = 256
    x_raw = jnp.linspace(-2.0 * jnp.pi, 2.0 * jnp.pi, N, dtype=jnp.float32)[:, None]
    mean = x_raw.mean()
    std = x_raw.std(ddof=1)            # torch.std default is unbiased

    kparams = prepare_kernel_params(tp, mean, std, use_bf16=use_bf16)

    # Main run: single grid step (tm = 256), lane-dense in/out.
    out = jax.block_until_ready(
        improved_net_forward(x_raw, kparams, use_bf16=use_bf16, num_cores=num_cores)
    )
    ref = reference_forward(x_raw, tp, mean, std)
    tol = 5e-2 if use_bf16 else 1e-4   # bf16 activations vs f32 reference
    assert out.shape == (N, 1)
    assert jnp.allclose(out, ref, atol=tol, rtol=tol), "mismatch vs reference"

    # Also exercise the multi-step + padded-tail path (G > 1, ragged N).
    N2 = 272
    x2 = jnp.linspace(-2.0 * jnp.pi, 2.0 * jnp.pi, N2, dtype=jnp.float32)[:, None]
    out2 = jax.block_until_ready(
        improved_net_forward(x2, kparams, tm=128, use_bf16=use_bf16, num_cores=num_cores)
    )
    ref2 = reference_forward(x2, tp, mean, std)
    assert out2.shape == (N2, 1)
    assert jnp.allclose(out2, ref2, atol=tol, rtol=tol), "mismatch vs reference (padded)"

    print("KERNEL_OK")
</pallas_src>

<mosaic_0001>
module attributes {stable_mosaic.version = 11 : i64} {
  func.func @mlp_kernel(%arg0: i32, %arg1: memref<1x1x256xf32, #tpu.memory_space<vmem>>, %arg2: memref<64x4xf32, #tpu.memory_space<vmem>>, %arg3: memref<64x64xf32, #tpu.memory_space<vmem>>, %arg4: memref<1x1xf32, #tpu.memory_space<smem>>, %arg5: memref<1x1x256xf32, #tpu.memory_space<vmem>>) attributes {dimension_semantics = [#tpu.dimension_semantics<parallel>], iteration_bounds = array<i64: 1>, scalar_prefetch = 0 : i64, scratch_operands = 0 : i64, tpu.core_type = #tpu.core_type<tc>, window_params = [{transform_indices = @transform_0, window_bounds = array<i64: 1, 1, 256>}, {pipeline_mode = #tpu.pipeline_mode<synchronous>, transform_indices = @transform_1, window_bounds = array<i64: 64, 4>}, {pipeline_mode = #tpu.pipeline_mode<synchronous>, transform_indices = @transform_2, window_bounds = array<i64: 64, 64>}, {transform_indices = @transform_3, window_bounds = array<i64: 1, 1>}, {transform_indices = @transform_4, window_bounds = array<i64: 1, 1, 256>}]} {
    %c0 = arith.constant 0 : index
    %c0_0 = arith.constant 0 : index
    %c0_1 = arith.constant 0 : index
    %0 = vector.load %arg1[%c0, %c0_0, %c0_1] : memref<1x1x256xf32, #tpu.memory_space<vmem>>, vector<1x1x256xf32>
    %1 = vector.shape_cast %0 : vector<1x1x256xf32> to vector<1x256xf32>
    %c0_2 = arith.constant 0 : index
    %c0_3 = arith.constant 0 : index
    %2 = vector.load %arg2[%c0_2, %c0_3] : memref<64x4xf32, #tpu.memory_space<vmem>>, vector<64x4xf32>
    %3 = vector.extract_strided_slice %2 {offsets = [0, 0], sizes = [64, 1], strides = [1, 1]} : vector<64x4xf32> to vector<64x1xf32>
    %4 = vector.extract_strided_slice %2 {offsets = [0, 1], sizes = [64, 1], strides = [1, 1]} : vector<64x4xf32> to vector<64x1xf32>
    %5 = vector.extract_strided_slice %2 {offsets = [0, 2], sizes = [64, 1], strides = [1, 1]} : vector<64x4xf32> to vector<64x1xf32>
    %6 = vector.extract_strided_slice %2 {offsets = [0, 3], sizes = [64, 1], strides = [1, 1]} : vector<64x4xf32> to vector<64x1xf32>
    %7 = vector.broadcast %3 : vector<64x1xf32> to vector<64x256xf32>
    %8 = vector.broadcast %1 : vector<1x256xf32> to vector<64x256xf32>
    %9 = arith.mulf %7, %8 : vector<64x256xf32>
    %10 = vector.broadcast %4 : vector<64x1xf32> to vector<64x256xf32>
    %11 = arith.addf %9, %10 : vector<64x256xf32>
    %12 = math.tanh %11 : vector<64x256xf32>
    %c0_4 = arith.constant 0 : index
    %c0_5 = arith.constant 0 : index
    %13 = vector.load %arg3[%c0_4, %c0_5] : memref<64x64xf32, #tpu.memory_space<vmem>>, vector<64x64xf32>
    %cst = arith.constant dense<0.000000e+00> : vector<64x256xf32>
    %14 = tpu.matmul %13, %12, %cst {dimension_numbers = #tpu.dot_dimension_numbers<[1], [0], [0], [1], [0, 0, 1, 1], [], []>, precision = #tpu.contract_precision<fp32>} : vector<64x64xf32>, vector<64x256xf32>, vector<64x256xf32> -> vector<64x256xf32>
    %15 = vector.broadcast %5 : vector<64x1xf32> to vector<64x256xf32>
    %16 = arith.addf %14, %15 : vector<64x256xf32>
    %17 = math.tanh %16 : vector<64x256xf32>
    %18 = vector.broadcast %6 : vector<64x1xf32> to vector<64x256xf32>
    %19 = arith.mulf %18, %17 : vector<64x256xf32>
    %cst_6 = arith.constant dense<0.000000e+00> : vector<256xf32>
    %20 = vector.multi_reduction <add>, %19, %cst_6 [0] : vector<64x256xf32> to vector<256xf32>
    %21 = vector.shape_cast %20 : vector<256xf32> to vector<1x256xf32>
    %c0_7 = arith.constant 0 : index
    %c0_8 = arith.constant 0 : index
    %22 = memref.load %arg4[%c0_7, %c0_8] : memref<1x1xf32, #tpu.memory_space<smem>>
    %23 = vector.broadcast %22 : f32 to vector<1x256xf32>
    %24 = arith.addf %21, %23 : vector<1x256xf32>
    %c0_9 = arith.constant 0 : index
    %c0_10 = arith.constant 0 : index
    %c0_11 = arith.constant 0 : index
    %25 = vector.load %arg5[%c0_9, %c0_10, %c0_11] : memref<1x1x256xf32, #tpu.memory_space<vmem>>, vector<1x1x256xf32>
    %26 = vector.shape_cast %25 : vector<1x1x256xf32> to vector<1x256xf32>
    %27 = vector.shape_cast %24 : vector<1x256xf32> to vector<1x1x256xf32>
    tpu.vector_store %arg5[%c0_9, %c0_10, %c0_11], %27 {strides = array<i32>} : memref<1x1x256xf32, #tpu.memory_space<vmem>>, vector<1x1x256xf32>,
    return
  }
  func.func @transform_0(%arg0: i32) -> (i32, i32, i32) {
    %c0_i32 = arith.constant 0 : i32
    %c0_i32_0 = arith.constant 0 : i32
    %c0_i32_1 = arith.constant 0 : i32
    return %arg0, %c0_i32, %c0_i32_0 : i32, i32, i32
  }
  func.func @transform_1(%arg0: i32) -> (i32, i32) {
    %c0_i32 = arith.constant 0 : i32
    %c0_i32_0 = arith.constant 0 : i32
    %c0_i32_1 = arith.constant 0 : i32
    return %c0_i32, %c0_i32_0 : i32, i32
  }
  func.func @transform_2(%arg0: i32) -> (i32, i32) {
    %c0_i32 = arith.constant 0 : i32
    %c0_i32_0 = arith.constant 0 : i32
    %c0_i32_1 = arith.constant 0 : i32
    return %c0_i32, %c0_i32_0 : i32, i32
  }
  func.func @transform_3(%arg0: i32) -> (i32, i32) {
    %c0_i32 = arith.constant 0 : i32
    %c0_i32_0 = arith.constant 0 : i32
    %c0_i32_1 = arith.constant 0 : i32
    return %c0_i32, %c0_i32_0 : i32, i32
  }
  func.func @transform_4(%arg0: i32) -> (i32, i32, i32) {
    %c0_i32 = arith.constant 0 : i32
    %c0_i32_0 = arith.constant 0 : i32
    %c0_i32_1 = arith.constant 0 : i32
    return %arg0, %c0_i32, %c0_i32_0 : i32, i32, i32
  }
}

</mosaic_0001>

<bundles_post_ra>
// kernel: tpu_custom_call.1
= control target key start
LH: loop header
LB: loop body
LE: loop exit
PB: predicated region body
PF: predicated region fallthrough
CT: control target
= control target key end

     0   :  { %v1450_v1 = vmov 1   ;;  %v1451_v2 = vmov 0   ;;  %s2161_s0 = inlined_call_operand.vmem [shape: f32[1,1,256], index: 0, kind: input, shape index: {}]   ;;  %s2162_s1 = inlined_call_operand.vmem [shape: f32[64,4], index: 1, kind: input, shape index: {}]   ;;  %s2163_s2 = inlined_call_operand.vmem [shape: f32[64,64], index: 2, kind: input, shape index: {}]   ;;  %s2164_s3 = inlined_call_operand.<no memory space> [shape: f32[1,1], index: 3, kind: input, shape index: {}]   ;;  %s2165_s4 = inlined_call_operand.hbm [shape: f32[1,1,256], index: 4, kind: output, shape index: {}]  }
   0x1   :  { %v1485_v0 = vld [vmem:[%s2162_s1 + $0x38] sm:$0xff]  ;;  %1353 = vset.pattern.permute.xlu1 %v1450_v1  ;;  %1352 = vset.pattern.permute.xlu0 %v1451_v2  ;;  %v1492_v3 = vld [vmem:[%s2162_s1 + $0x30] sm:$0xff] }
   0x2   :  { %124 = vperm.xlu1 %1353, %v1485_v0   ;;  %65 = vperm.xlu0 %1352, %v1485_v0  }
   0x3   :  { %10 = vsyncpa [#allocation4], 0  ;;  %v1497_v4 = vld [vmem:[%s2162_s1 + $0x28] sm:$0xff]  ;;  %v1504_v5 = vld [vmem:[%s2162_s1 + $0x18] sm:$0xff]  ;;  %v1452_v10 = vmov 0.0   ;;  %v2166_v11 = vlaneseq  ;;  %v1453_v40 = vmov 2  }
   0x4   :  { %v1509_v6 = vld [vmem:[%s2162_s1 + $0x20] sm:$0xff]  ;;  %v1525_v8 = vld [vmem:[%s2162_s1 + $0x10] sm:$0xff]  ;;  %v1532_v9 = vld [vmem:[%s2162_s1 + $0x8] sm:$0xff]  ;;  %304 = vmatprep.mubr.f32.mxu0 %v1452_v10  ;;  %537 = vmatprep.mubr.f32.mxu1 %v1452_v10  ;;  %vm199_vm0 = vcmask 523264   ;;  %s1456_s22 = smov [#allocation3]  }
   0x5   :  { %v1520_v7 = vld [vmem:[%s2162_s1] sm:$0xff]  ;;  %v1541_v12 = vshrl.u32 %v2166_v11, 7  ;;  %s1337_s23 = sshll.u32 %s1456_s22, 4  ;;  %s1338_s23 = int_to_ptr.vmem [resolvable:$true] %s1337_s23 }
   0x6   :  { %1354 = vset.pattern.permute.xlu1 %v1451_v2  ;;  %60 = vperm.xlu0 %1352, %v1492_v3   ;;  %v19_v15 = vld [vmem:[%s2161_s0] sm:$0x3]  ;;  %s1428_s24 = scalar_lea.vmem %s1338_s23, 32  ;;  %p1433_p1 = scmp.lt.s32.totalorder %s1338_s23, %s1338_s23 }
   0x7   :  { %55 = vperm.xlu1 %1354, %v1497_v4   ;;  %2183 = vst [vmem:[#allocation6_spill] sm:$0xff] %v1541_v12  ;;  %v71_v13 = vsub.s32 0, %v1541_v12  ;;  %v75_v14 = vsub.s32 1, %v1541_v12  ;;  %v159_v58 = vld [vmem:[%s2163_s2] sm:$0xff]  ;;  %p1429_p0 = scmp.ne.s32.totalorder %s1338_s23, %s1428_s24  ;;  %p1434_p2 = scmp.lt.s32.totalorder %s1428_s24, %s1428_s24 }
   0x8   :  { %v1592_v63 = vsel %vm199_vm0, %v159_v58, 0 }
   0x9   :  { %v1548_v16 = vrot.slane %v19_v15, %v71_v13  ;;  %v1550_v17 = vrot.slane %v19_v15, %v75_v14  ;;  %p1435_p3 = por %p1434_p2, %p1433_p1 }
   0xa   :  { %45 = vperm.xlu0 %1352, %v1504_v5  }
   0xb   :  { %50 = vperm.xlu1 %1354, %v1509_v6   ;;  %p1436_p4 = pnand %p1435_p3, %p1429_p0 }
   0xe   :  { %1356 = vset.pattern.permute.xlu0 %v1450_v1 }
   0xf   :  { %1355 = vset.pattern.permute.xlu1 %v1450_v1  ;;  %120 = vperm.xlu0 %1356, %v1492_v3  }
  0x10   :  { %116 = vperm.xlu1 %1355, %v1497_v4  }
  0x13   :  { %108 = vperm.xlu0 %1356, %v1504_v5  }
  0x14   :  { %112 = vperm.xlu1 %1355, %v1509_v6  }
  0x17   :  { %1359 = vset.pattern.permute.xlu0 %v1451_v2 }
  0x18   :  { %1357 = vset.pattern.permute.xlu1 %v1451_v2  ;;  %30 = vperm.xlu0 %1359, %v1520_v7  }
  0x19   :  { %40 = vperm.xlu1 %1357, %v1525_v8  }
  0x1c   :  { %1360 = vset.pattern.permute.xlu0 %v1453_v40 }
  0x1d   :  { %35 = vperm.xlu1 %1357, %v1532_v9   ;;  %168 = vperm.xlu0 %1360, %v1520_v7  }
  0x21   :  { %1358 = vset.pattern.permute.xlu1 %v1450_v1  ;;  %180 = vperm.xlu0 %1360, %v1504_v5  }
  0x22   :  { %104 = vperm.xlu1 %1358, %v1525_v8  }
  0x25   :  { %188 = vperm.xlu0 %1360, %v1497_v4  }
  0x26   :  { %100 = vperm.xlu1 %1358, %v1532_v9  }
  0x29   :  { %196 = vperm.xlu0 %1360, %v1485_v0  }
  0x2a   :  { %96 = vperm.xlu1 %1358, %v1520_v7  }
  0x2e   :  { %1361 = vset.pattern.permute.xlu1 %v1453_v40 }
  0x2f   :  { %172 = vperm.xlu1 %1361, %v1532_v9  }
  0x33   :  { %176 = vperm.xlu1 %1361, %v1525_v8  }
  0x37   :  { %184 = vperm.xlu1 %1361, %v1509_v6  }
  0x3b   :  { %192 = vperm.xlu1 %1361, %v1492_v3  }
  0x7d   :  { %v125_v18 = vpop.permute.xlu1 %124  ;;  %v66_v19 = vpop.permute.xlu0 %65 }
  0x7e   :  { %v93_v20 = vmul.f32 %v1548_v16, %v66_v19  ;;  %v94_v21 = vmul.f32 %v1550_v17, %v66_v19 }
  0x80   :  { %v141_v22 = vadd.f32 %v125_v18, %v93_v20  ;;  %v142_v23 = vadd.f32 %v125_v18, %v94_v21  ;;  %v1599_v18 = vand.u32 4294901760, %v1592_v63 }
  0x81   :  { %v61_v24 = vpop.permute.xlu0 %60 }
  0x82   :  { %1364 = vtanh.f32 %v141_v22  ;;  %v56_v25 = vpop.permute.xlu1 %55  ;;  %v91_v28 = vmul.f32 %v1548_v16, %v61_v24  ;;  %v92_v29 = vmul.f32 %v1550_v17, %v61_v24 }
  0x83   :  { %1366 = vtanh.f32 %v142_v23  ;;  %v89_v30 = vmul.f32 %v1548_v16, %v56_v25  ;;  %v90_v31 = vmul.f32 %v1550_v17, %v56_v25 }
  0x85   :  { %v46_v26 = vpop.permute.xlu0 %45 }
  0x86   :  { %v51_v27 = vpop.permute.xlu1 %50  ;;  %v85_v33 = vmul.f32 %v1548_v16, %v46_v26  ;;  %v86_v34 = vmul.f32 %v1550_v17, %v46_v26 }
  0x87   :  { %v87_v41 = vmul.f32 %v1548_v16, %v51_v27  ;;  %v88_v42 = vmul.f32 %v1550_v17, %v51_v27 }
  0x8a   :  { %v121_v32 = vpop.permute.xlu0 %120 }
  0x8b   :  { %v139_v35 = vadd.f32 %v121_v32, %v91_v28  ;;  %v140_v36 = vadd.f32 %v121_v32, %v92_v29  ;;  %v117_v37 = vpop.permute.xlu1 %116 }
  0x8c   :  { %v137_v38 = vadd.f32 %v117_v37, %v89_v30  ;;  %v138_v39 = vadd.f32 %v117_v37, %v90_v31 }
  0x8d   :  { %1368 = vtanh.f32 %v139_v35 }
  0x8e   :  { %1370 = vtanh.f32 %v140_v36  ;;  %v109_v43 = vpop.permute.xlu0 %108 }
  0x8f   :  { %v1365_v44 = vpop.eup %1364  ;;  %1372 = vtanh.f32 %v137_v38  ;;  %v133_v45 = vadd.f32 %v109_v43, %v85_v33  ;;  %v134_v46 = vadd.f32 %v109_v43, %v86_v34  ;;  %v113_v47 = vpop.permute.xlu1 %112 }
  0x90   :  { %v1367_v48 = vpop.eup %1366  ;;  %1374 = vtanh.f32 %v138_v39  ;;  %v135_v49 = vadd.f32 %v113_v47, %v87_v41  ;;  %v136_v50 = vadd.f32 %v113_v47, %v88_v42  ;;  %v1564_v51 = vand.u32 4294901760, %v1365_v44 }
  0x91   :  { %1376 = vtanh.f32 %v133_v45  ;;  %v1566_v52 = vand.u32 4294901760, %v1367_v48 }
  0x92   :  { %1378 = vtanh.f32 %v134_v46  ;;  %v1569_v53 = vsub.f32 %v1365_v44, %v1564_v51 }
  0x93   :  { %1380 = vtanh.f32 %v135_v49  ;;  %241 = vmatprep.subr.mxu0 %v1566_v52  ;;  %v1575_v54 = vsub.f32 %v1367_v48, %v1566_v52  ;;  %v31_v2 = vpop.permute.xlu0 %30 }
  0x94   :  { %1382 = vtanh.f32 %v136_v50  ;;  %243 = vmatpush1.msra.mxu0 %v1564_v51  ;;  %v41_v55 = vpop.permute.xlu1 %40  ;;  %v417_v56 = vand.u32 4294901760, %v1569_v53  ;;  %v79_v23 = vmul.f32 %v1548_v16, %v31_v2  ;;  %v80_v28 = vmul.f32 %v1550_v17, %v31_v2 }
  0x95   :  { %v411_v57 = vand.u32 4294901760, %v1575_v54  ;;  %v83_v20 = vmul.f32 %v1548_v16, %v41_v55  ;;  %v84_v21 = vmul.f32 %v1550_v17, %v41_v55  ;;  %v160_v55 = vld [vmem:[%s2163_s2 + $0x8] sm:$0xff] }
  0x96   :  { %v418_v59 = vsub.f32 %v1569_v53, %v417_v56 }
  0x97   :  { %v412_v60 = vsub.f32 %v1575_v54, %v411_v57 }
  0x98   :  { %v36_v61 = vpop.permute.xlu1 %35  ;;  %v419_v62 = vand.u32 4294901760, %v418_v59 }
  0x99   :  { %v413_v1 = vand.u32 4294901760, %v412_v60  ;;  %v81_v25 = vmul.f32 %v1548_v16, %v36_v61  ;;  %v82_v16 = vmul.f32 %v1550_v17, %v36_v61 }
  0x9a   :  { %v1369_v13 = vpop.eup %1368 }
  0x9b   :  { %v1371_v14 = vpop.eup %1370  ;;  %414 = vmatprep.subr.mxu1 %v413_v1  ;;  %v1596_v15 = vand.u32 4294901760, %v1369_v13 }
  0x9c   :  { %v1373_v19 = vpop.eup %1372  ;;  %420 = vmatpush1.msra.mxu1 %v419_v62  ;;  %v1603_v22 = vand.u32 4294901760, %v1371_v14 }
  0x9d   :  { %v1375_v24 = vpop.eup %1374  ;;  %v105_v26 = vpop.permute.xlu1 %104  ;;  %v1607_v27 = vand.u32 4294901760, %v1373_v19  ;;  %v1611_v29 = vsub.f32 %v1369_v13, %v1596_v15 }
  0x9e   :  { %v1377_v30 = vpop.eup %1376  ;;  %v131_v31 = vadd.f32 %v105_v26, %v83_v20  ;;  %v132_v32 = vadd.f32 %v105_v26, %v84_v21  ;;  %245 = vmatprep.subr.mxu0 %v1603_v22  ;;  %v1614_v33 = vand.u32 4294901760, %v1375_v24  ;;  %v1617_v34 = vsub.f32 %v1371_v14, %v1603_v22 }
  0x9f   :  { %v1379_v35 = vpop.eup %1378  ;;  %247 = vmatpush1.msra.mxu0 %v1596_v15  ;;  %v1621_v36 = vand.u32 4294901760, %v1377_v30  ;;  %v429_v37 = vand.u32 4294901760, %v1611_v29  ;;  %v1625_v38 = vsub.f32 %v1373_v19, %v1607_v27  ;;  %v204_v20 = vsel %vm199_vm0, %v160_v55, 0 }
  0xa0   :  { %v1381_v39 = vpop.eup %1380  ;;  %1384 = vtanh.f32 %v131_v31  ;;  %249 = vmatprep.subr.mxu0 %v1614_v33  ;;  %v1628_v40 = vand.u32 4294901760, %v1379_v35  ;;  %v423_v41 = vand.u32 4294901760, %v1617_v34  ;;  %v1632_v42 = vsub.f32 %v1375_v24, %v1614_v33 }
  0xa1   :  { %v1383_v17 = vpop.eup %1382  ;;  %1386 = vtanh.f32 %v132_v32  ;;  %251 = vmatpush1.msra.mxu0 %v1607_v27  ;;  %v101_v43 = vpop.permute.xlu1 %100  ;;  %v1635_v44 = vand.u32 4294901760, %v1381_v39  ;;  %v430_v45 = vsub.f32 %v1611_v29, %v429_v37  ;;  %v2179_v46 = vand.u32 4294901760, %v1625_v38 }
  0xa2   :  { %v129_v47 = vadd.f32 %v101_v43, %v81_v25  ;;  %v130_v48 = vadd.f32 %v101_v43, %v82_v16  ;;  %v1641_v49 = vand.u32 4294901760, %v1383_v17  ;;  %v424_v50 = vsub.f32 %v1617_v34, %v423_v41 }
  0xa3   :  { %v431_v58 = vand.u32 4294901760, %v430_v45  ;;  %v435_v59 = vand.u32 4294901760, %v1632_v42  ;;  %v442_v60 = vsub.f32 %v1625_v38, %v2179_v46  ;;  %v1654_v61 = vsub.f32 %v1381_v39, %v1635_v44 }
  0xa4   :  { %1388 = vtanh.f32 %v129_v47  ;;  %253 = vmatprep.subr.mxu0 %v1641_v49  ;;  %v425_v62 = vand.u32 4294901760, %v424_v50  ;;  %v1658_v1 = vsub.f32 %v1383_v17, %v1641_v49  ;;  %v1661_v2 = vsub.f32 %v1379_v35, %v1628_v40 }
  0xa5   :  { %1390 = vtanh.f32 %v130_v48  ;;  %255 = vmatpush1.msra.mxu0 %v1635_v44  ;;  %v97_v13 = vpop.permute.xlu1 %96  ;;  %v436_v14 = vsub.f32 %v1632_v42, %v435_v59  ;;  %v2172_v19 = vand.u32 4294901760, %v1654_v61  ;;  %v443_v32 = vand.u32 4294901760, %v442_v60 }
  0xa6   :  { %257 = vmatprep.subr.mxu0 %v1628_v40  ;;  %v127_v21 = vadd.f32 %v97_v13, %v79_v23  ;;  %v128_v24 = vadd.f32 %v97_v13, %v80_v28  ;;  %426 = vmatprep.subr.mxu1 %v425_v62  ;;  %v2176_v25 = vand.u32 4294901760, %v1658_v1  ;;  %v2171_v26 = vand.u32 4294901760, %v1661_v2 }
  0xa7   :  { %259 = vmatpush1.msra.mxu0 %v1621_v36  ;;  %432 = vmatpush1.msra.mxu1 %v431_v58  ;;  %v437_v31 = vand.u32 4294901760, %v436_v14  ;;  %v454_v35 = vsub.f32 %v1654_v61, %v2172_v19  ;;  %v1677_v16 = vsub.f32 %v1377_v30, %v1621_v36  ;;  %v1688_v43 = vsub.f32 %v1592_v63, %v1599_v18  ;;  %v161_v30 = vld [vmem:[%s2163_s2 + $0x10] sm:$0xff] }
  0xa8   :  { %1392 = vtanh.f32 %v127_v21  ;;  %v448_v23 = vsub.f32 %v1658_v1, %v2176_v25  ;;  %v460_v28 = vsub.f32 %v1661_v2, %v2171_v26  ;;  %v1454_v45 = vmov 3  }
  0xa9   :  { %1394 = vtanh.f32 %v128_v24  ;;  %438 = vmatprep.subr.mxu1 %v437_v31  ;;  %v455_v39 = vand.u32 4294901760, %v454_v35  ;;  %v2169_v17 = vand.u32 4294901760, %v1677_v16  ;;  %1362 = vset.pattern.permute.xlu1 %v1454_v45  ;;  %v1693_v48 = vand.u32 4294901760, %v204_v20 }
  0xaa   :  { %444 = vmatpush1.msra.mxu1 %v443_v32  ;;  %v449_v47 = vand.u32 4294901760, %v448_v23  ;;  %1231 = vperm.xlu1 %1362, %v1520_v7   ;;  %v461_v63 = vand.u32 4294901760, %v460_v28  ;;  %v207_v55 = vsel %vm199_vm0, %v161_v30, 0  ;;  %v2170_v62 = vand.u32 4294901760, %v1688_v43 }
  0xab   :  { %v466_v50 = vsub.f32 %v1677_v16, %v2169_v17  ;;  %1363 = vset.pattern.permute.xlu0 %v1454_v45  ;;  %v1705_v7 = vsub.f32 %v204_v20, %v1693_v48  ;;  %v1710_v24 = vand.u32 4294901760, %v207_v55 }
  0xac   :  { %450 = vmatprep.subr.mxu1 %v449_v47  ;;  %1235 = vperm.xlu0 %1363, %v1532_v9   ;;  %v162_v9 = vld [vmem:[%s2163_s2 + $0x18] sm:$0xff] }
  0xad   :  { %v1385_v58 = vpop.eup %1384  ;;  %456 = vmatpush1.msra.mxu1 %v455_v39  ;;  %v467_v60 = vand.u32 4294901760, %v466_v50  ;;  %v2173_v39 = vand.u32 4294901760, %v1705_v7  ;;  %v1737_v47 = vsub.f32 %v207_v55, %v1710_v24 }
  0xae   :  { %v1387_v13 = vpop.eup %1386  ;;  %462 = vmatprep.subr.mxu1 %v461_v63  ;;  %v1702_v14 = vand.u32 4294901760, %v1385_v58  ;;  %1239 = vperm.xlu1 %1362, %v1525_v8   ;;  %v308_v8 = vsub.f32 %v1688_v43, %v2170_v62 }
  0xaf   :  { %468 = vmatpush1.msra.mxu1 %v467_v60  ;;  %v1708_v21 = vand.u32 4294901760, %v1387_v13  ;;  %v2177_v62 = vand.u32 4294901760, %v1737_v47 }
  0xb0   :  { %v1716_v31 = vsub.f32 %v1385_v58, %v1702_v14  ;;  %1247 = vperm.xlu0 %1363, %v1509_v6   ;;  %v210_v6 = vsel %vm199_vm0, %v162_v9, 0  ;;  %v309_v60 = vand.u32 4294901760, %v308_v8  ;;  %v163_v9 = vld [vmem:[%s2163_s2 + $0x20] sm:$0xff]  ;;  %v319_v8 = vsub.f32 %v1705_v7, %v2173_v39 }
  0xb1   :  { %v1389_v32 = vpop.eup %1388  ;;  %261 = vmatprep.subr.mxu0 %v1708_v21  ;;  %v1721_v20 = vsub.f32 %v1387_v13, %v1708_v21  ;;  %v1753_v13 = vand.u32 4294901760, %v210_v6  ;;  %v213_v19 = vsel %vm199_vm0, %v163_v9, 0 }
  0xb2   :  { %v1391_v35 = vpop.eup %1390  ;;  %263 = vmatpush1.msra.mxu0 %v1702_v14  ;;  %v1727_v23 = vand.u32 4294901760, %v1389_v32  ;;  %v2167_v28 = vand.u32 4294901760, %v1716_v31  ;;  %1243 = vperm.xlu1 %1362, %v1504_v5   ;;  %v1797_v25 = vand.u32 4294901760, %v213_v19 }
  0xb3   :  { %v1733_v30 = vand.u32 4294901760, %v1391_v35  ;;  %v2168_v45 = vand.u32 4294901760, %v1721_v20  ;;  %v1785_v39 = vsub.f32 %v210_v6, %v1753_v13  ;;  %v330_v6 = vsub.f32 %v1737_v47, %v2177_v62 }
  0xb4   :  { %v478_v50 = vsub.f32 %v1716_v31, %v2167_v28  ;;  %v1743_v63 = vsub.f32 %v1389_v32, %v1727_v23  ;;  %1255 = vperm.xlu0 %1363, %v1492_v3  }
  0xb5   :  { %v1393_v58 = vpop.eup %1392  ;;  %265 = vmatprep.subr.mxu0 %v1733_v30  ;;  %v472_v5 = vsub.f32 %v1721_v20, %v2168_v45  ;;  %v1751_v55 = vsub.f32 %v1391_v35, %v1733_v30 }
  0xb6   :  { %v1395_v32 = vpop.eup %1394  ;;  %267 = vmatpush1.msra.mxu0 %v1727_v23  ;;  %v1759_v3 = vand.u32 4294901760, %v1393_v58  ;;  %v479_v11 = vand.u32 4294901760, %v478_v50  ;;  %v2174_v28 = vand.u32 4294901760, %v1743_v63  ;;  %1251 = vperm.xlu1 %1362, %v1497_v4  }
  0xb7   :  { %v1766_v35 = vand.u32 4294901760, %v1395_v32  ;;  %v473_v45 = vand.u32 4294901760, %v472_v5  ;;  %v2175_v17 = vand.u32 4294901760, %v1751_v55 }
  0xb8   :  { %v490_v26 = vsub.f32 %v1743_v63, %v2174_v28  ;;  %v1774_v50 = vsub.f32 %v1393_v58, %v1759_v3  ;;  %v164_v58 = vld [vmem:[%s2163_s2 + $0x28] sm:$0xff]  ;;  %v320_v28 = vand.u32 4294901760, %v319_v8  ;;  %v340_v8 = vand.u32 4294901760, %v1785_v39 }
  0xb9   :  { %269 = vmatprep.subr.mxu0 %v1766_v35  ;;  %474 = vmatprep.subr.mxu1 %v473_v45  ;;  %v484_v4 = vsub.f32 %v1751_v55, %v2175_v17  ;;  %v1782_v5 = vsub.f32 %v1395_v32, %v1766_v35 }
  0xba   :  { %271 = vmatpush1.msra.mxu0 %v1759_v3  ;;  %480 = vmatpush1.msra.mxu1 %v479_v11  ;;  %v491_v9 = vand.u32 4294901760, %v490_v26  ;;  %v2178_v45 = vand.u32 4294901760, %v1774_v50  ;;  %v216_v26 = vsel %vm199_vm0, %v164_v58, 0  ;;  %v331_v58 = vand.u32 4294901760, %v330_v6 }
  0xbb   :  { %310 = vmatmul.mubr.f32.vlgmr.msra.gmra.mxu0 %v309_v60  ;;  %612 = vmatprep.subr.mxu0 %v1575_v54  ;;  %v485_v17 = vand.u32 4294901760, %v484_v4  ;;  %v2180_v32 = vand.u32 4294901760, %v1782_v5  ;;  %v165_v4 = vld [vmem:[%s2163_s2 + $0x30] sm:$0xff]  ;;  %v1818_v46 = vand.u32 4294901760, %v216_v26 }
  0xbc   :  { %615 = vmatpush1.msra.mxu0 %v1569_v53  ;;  %315 = vmatprep.mubr.f32.mxu0 %v1452_v10  ;;  %v502_v11 = vsub.f32 %v1774_v50, %v2178_v45  ;;  %v1816_v45 = vsub.f32 %v213_v19, %v1797_v25  ;;  %v166_v19 = vld [vmem:[%s2163_s2 + $0x38] sm:$0xff]  ;;  %v2186_v53 = vand.u32 4294901760, %v1654_v61 }
  0xbd   :  { %486 = vmatprep.subr.mxu1 %v485_v17  ;;  %618 = vmatprep.subr.mxu0 %v1617_v34  ;;  %v496_v60 = vsub.f32 %v1782_v5, %v2180_v32  ;;  %v219_v32 = vsel %vm199_vm0, %v165_v4, 0  ;;  %v1834_v6 = vsub.f32 %v216_v26, %v1818_v46  ;;  %v2190_v34 = vand.u32 4294901760, %v1721_v20 }
  0xbe   :  { %492 = vmatpush1.msra.mxu1 %v491_v9  ;;  %621 = vmatpush1.msra.mxu0 %v1611_v29  ;;  %v503_v62 = vand.u32 4294901760, %v502_v11  ;;  %v2181_v9 = vand.u32 4294901760, %v1816_v45  ;;  %v1836_v11 = vand.u32 4294901760, %v219_v32  ;;  %v2189_v29 = vand.u32 4294901760, %v1677_v16 }
  0xbf   :  { %321 = vmatmul.mubr.f32.gmra.mxu0 %v320_v28  ;;  %624 = vmatprep.subr.mxu0 %v1632_v42  ;;  %v497_v17 = vand.u32 4294901760, %v496_v60  ;;  %v341_v28 = vsub.f32 %v1785_v39, %v340_v8  ;;  %v222_v60 = vsel %vm199_vm0, %v166_v19, 0  ;;  %v362_v4 = vand.u32 4294901760, %v1834_v6 }
  0xc0   :  { %627 = vmatpush1.msra.mxu0 %v1625_v38  ;;  %326 = vmatprep.mubr.f32.mxu0 %v1452_v10  ;;  %v352_v26 = vsub.f32 %v1816_v45, %v2181_v9 }
  0xc1   :  { %498 = vmatprep.subr.mxu1 %v497_v17  ;;  %630 = vmatprep.subr.mxu0 %v1658_v1  ;;  %v1852_v17 = vsub.f32 %v219_v32, %v1836_v11  ;;  %v363_v32 = vsub.f32 %v1834_v6, %v362_v4 }
  0xc2   :  { %504 = vmatpush1.msra.mxu1 %v503_v62  ;;  %633 = vmatpush1.msra.mxu0 %v1654_v61  ;;  %v342_v62 = vand.u32 4294901760, %v341_v28  ;;  %v353_v28 = vand.u32 4294901760, %v352_v26 }
  0xc3   :  { %332 = vmatmul.mubr.f32.gmra.mxu0 %v331_v58  ;;  %539 = vmatmul.mubr.f32.vlgmr.msra.gmra.mxu1 %v1599_v18  ;;  %v1854_v58 = vand.u32 4294901760, %v222_v60  ;;  %v373_v19 = vand.u32 4294901760, %v1852_v17 }
  0xc4   :  { %636 = vmatprep.subr.mxu0 %v1661_v2  ;;  %772 = vmatprep.subr.mxu1 %v1566_v52 }
  0xc5   :  { %639 = vmatpush1.msra.mxu0 %v1677_v16  ;;  %774 = vmatpush1.msra.mxu1 %v1564_v51  ;;  %v1868_v9 = vsub.f32 %v222_v60, %v1854_v58  ;;  %v374_v60 = vsub.f32 %v1852_v17, %v373_v19 }
  0xc6   :  { %642 = vmatprep.subr.mxu0 %v1721_v20  ;;  %776 = vmatprep.subr.mxu1 %v1603_v22 }
  0xc7   :  { %337 = vmatprep.mubr.f32.mxu0 %v1452_v10  ;;  %544 = vmatprep.mubr.f32.mxu1 %v1452_v10  ;;  %v384_v26 = vand.u32 4294901760, %v1868_v9 }
  0xc8   :  { %645 = vmatpush1.msra.mxu0 %v1716_v31  ;;  %778 = vmatpush1.msra.mxu1 %v1596_v15 }
  0xc9   :  { %343 = vmatmul.mubr.f32.gmra.mxu0 %v342_v62  ;;  %546 = vmatmul.mubr.f32.gmra.mxu1 %v1693_v48  ;;  %v364_v62 = vand.u32 4294901760, %v363_v32  ;;  %v385_v32 = vsub.f32 %v1868_v9, %v384_v26 }
  0xca   :  { %648 = vmatprep.subr.mxu0 %v1751_v55  ;;  %780 = vmatprep.subr.mxu1 %v1614_v33 }
  0xcb   :  { %651 = vmatpush1.msra.mxu0 %v1743_v63  ;;  %782 = vmatpush1.msra.mxu1 %v1607_v27  ;;  %v386_v54 = vand.u32 4294901760, %v385_v32 }
  0xcc   :  { %654 = vmatprep.subr.mxu0 %v1782_v5  ;;  %784 = vmatprep.subr.mxu1 %v1641_v49 }
  0xcd   :  { %348 = vmatprep.mubr.f32.mxu0 %v1452_v10  ;;  %551 = vmatprep.mubr.f32.mxu1 %v1452_v10 }
  0xce   :  { %657 = vmatpush1.msra.mxu0 %v1774_v50  ;;  %786 = vmatpush1.msra.mxu1 %v1635_v44 }
  0xcf   :  { %354 = vmatmul.mubr.f32.gmra.mxu0 %v353_v28  ;;  %553 = vmatmul.mubr.f32.gmra.mxu1 %v1710_v24  ;;  %v375_v28 = vand.u32 4294901760, %v374_v60 }
  0xd0   :  { %788 = vmatprep.subr.mxu1 %v1628_v40  ;;  %927 = vmatprep.subr.mxu0 %v411_v57  ;;  %v2188_v57 = vand.u32 4294901760, %v1688_v43 }
  0xd1   :  { %790 = vmatpush1.msra.mxu1 %v1621_v36  ;;  %359 = vmatprep.mubr.f32.mxu0 %v1452_v10 }
  0xd2   :  { %792 = vmatprep.subr.mxu1 %v1708_v21  ;;  %558 = vmatprep.mubr.f32.mxu1 %v1452_v10 }
  0xd3   :  { %794 = vmatpush1.msra.mxu1 %v1702_v14  ;;  %365 = vmatmul.mubr.f32.gmra.mxu0 %v364_v62 }
  0xd4   :  { %560 = vmatmul.mubr.f32.gmra.mxu1 %v1753_v13  ;;  %796 = vmatprep.subr.mxu1 %v1733_v30 }
  0xd5   :  { %798 = vmatpush1.msra.mxu1 %v1727_v23  ;;  %370 = vmatprep.mubr.f32.mxu0 %v1452_v10 }
  0xd6   :  { %800 = vmatprep.subr.mxu1 %v1766_v35  ;;  %565 = vmatprep.mubr.f32.mxu1 %v1452_v10 }
  0xd7   :  { %802 = vmatpush1.msra.mxu1 %v1759_v3  ;;  %376 = vmatmul.mubr.f32.gmra.mxu0 %v375_v28 }
  0xd8   :  { %567 = vmatmul.mubr.f32.gmra.mxu1 %v1797_v25  ;;  %1094 = vmatprep.subr.mxu1 %v1566_v52  ;;  %v2185_v52 = vand.u32 4294901760, %v1658_v1 }
  0xd9   :  { %381 = vmatprep.mubr.f32.mxu0 %v1452_v10  ;;  %572 = vmatprep.mubr.f32.mxu1 %v1452_v10 }
  0xda   :  { %1259 = vperm.xlu1 %1362, %v1485_v0   ;;  %v2184_v0 = vand.u32 4294901760, %v1625_v38  ;;  %v2192_v38 = vand.u32 4294901760, %v1751_v55 }
  0xdb   :  { %387 = vmatmul.mubr.f32.gmra.mxu0 %v386_v54 }
  0xdc   :  { %574 = vmatmul.mubr.f32.gmra.mxu1 %v1818_v46  ;;  %690 = vmatprep.mubr.f32.mxu0 %v1452_v10 }
  0xdd   :  { %579 = vmatprep.mubr.f32.mxu1 %v1452_v10 }
  0xdf   :  { %693 = vmatmul.mubr.f32.vlgmr.msra.gmra.mxu0 %v1688_v43 }
  0xe0   :  { %581 = vmatmul.mubr.f32.gmra.mxu1 %v1836_v11  ;;  %931 = vmatpush1.msra.mxu0 %v417_v56  ;;  %v2187_v56 = vand.u32 4294901760, %v1661_v2 }
  0xe1   :  { %935 = vmatprep.subr.mxu0 %v423_v41  ;;  %586 = vmatprep.mubr.f32.mxu1 %v1452_v10  ;;  %v2196_v41 = vand.u32 4294901760, %v1774_v50 }
  0xe2   :  { %939 = vmatpush1.msra.mxu0 %v429_v37  ;;  %698 = vmatprep.mubr.f32.mxu0 %v1452_v10  ;;  %v2191_v37 = vand.u32 4294901760, %v1716_v31 }
  0xe3   :  { %943 = vmatprep.subr.mxu0 %v435_v59  ;;  %701 = vmatmul.mubr.f32.gmra.mxu0 %v1705_v7  ;;  %v173_v59 = vpop.permute.xlu1 %172 }
  0xe4   :  { %588 = vmatmul.mubr.f32.gmra.mxu1 %v1854_v58  ;;  %947 = vmatpush1.msra.mxu0 %v2184_v0 }
  0xe5   :  { %951 = vmatprep.subr.mxu0 %v2185_v52  ;;  %706 = vmatprep.mubr.f32.mxu0 %v1452_v10 }
  0xe6   :  { %955 = vmatpush1.msra.mxu0 %v2186_v53  ;;  %835 = vmatprep.mubr.f32.mxu1 %v1452_v10 }
  0xe7   :  { %959 = vmatprep.subr.mxu0 %v2187_v56  ;;  %709 = vmatmul.mubr.f32.gmra.mxu0 %v1737_v47 }
  0xe8   :  { %839 = vmatmul.mubr.f32.vlgmr.msra.gmra.mxu1 %v2188_v57  ;;  %963 = vmatpush1.msra.mxu0 %v2189_v29 }
  0xe9   :  { %1096 = vmatpush1.msra.mxu1 %v1564_v51  ;;  %967 = vmatprep.subr.mxu0 %v2190_v34  ;;  %v2193_v51 = vand.u32 4294901760, %v1705_v7 }
  0xea   :  { %1098 = vmatprep.subr.mxu1 %v1603_v22  ;;  %971 = vmatpush1.msra.mxu0 %v2191_v37  ;;  %v2194_v22 = vand.u32 4294901760, %v1743_v63 }
  0xeb   :  { %1100 = vmatpush1.msra.mxu1 %v1596_v15  ;;  %714 = vmatprep.mubr.f32.mxu0 %v1452_v10  ;;  %v2195_v15 = vand.u32 4294901760, %v1782_v5 }
  0xec   :  { %844 = vmatprep.mubr.f32.mxu1 %v1452_v10  ;;  %975 = vmatprep.subr.mxu0 %v2192_v38 }
  0xed   :  { %1102 = vmatprep.subr.mxu1 %v1614_v33  ;;  %717 = vmatmul.mubr.f32.gmra.mxu0 %v1785_v39  ;;  %v2198_v33 = vand.u32 4294901760, %v1816_v45 }
  0xee   :  { %848 = vmatmul.mubr.f32.gmra.mxu1 %v2193_v51  ;;  %979 = vmatpush1.msra.mxu0 %v2194_v22 }
  0xef   :  { %1104 = vmatpush1.msra.mxu1 %v1607_v27  ;;  %983 = vmatprep.subr.mxu0 %v2195_v15  ;;  %v2197_v27 = vand.u32 4294901760, %v1737_v47 }
  0xf0   :  { %1106 = vmatprep.subr.mxu1 %v1641_v49  ;;  %987 = vmatpush1.msra.mxu0 %v2196_v41 }
  0xf1   :  { %1108 = vmatpush1.msra.mxu1 %v1635_v44  ;;  %722 = vmatprep.mubr.f32.mxu0 %v1452_v10 }
  0xf2   :  { %853 = vmatprep.mubr.f32.mxu1 %v1452_v10  ;;  %1110 = vmatprep.subr.mxu1 %v1628_v40  ;;  %v169_v40 = vpop.permute.xlu0 %168 }
  0xf3   :  { %725 = vmatmul.mubr.f32.gmra.mxu0 %v1816_v45  ;;  %857 = vmatmul.mubr.f32.gmra.mxu1 %v2197_v27 }
  0xf4   :  { %1112 = vmatpush1.msra.mxu1 %v1621_v36  ;;  %730 = vmatprep.mubr.f32.mxu0 %v1452_v10 }
  0xf5   :  { %1114 = vmatprep.subr.mxu1 %v1708_v21  ;;  %862 = vmatprep.mubr.f32.mxu1 %v1452_v10 }
  0xf6   :  { %1116 = vmatpush1.msra.mxu1 %v1702_v14 }
  0xf7   :  { %1118 = vmatprep.subr.mxu1 %v1733_v30  ;;  %733 = vmatmul.mubr.f32.gmra.mxu0 %v1834_v6  ;;  %v181_v30 = vpop.permute.xlu0 %180 }
  0xf8   :  { %866 = vmatmul.mubr.f32.gmra.mxu1 %v340_v8  ;;  %738 = vmatprep.mubr.f32.mxu0 %v1452_v10 }
  0xf9   :  { %1120 = vmatpush1.msra.mxu1 %v1727_v23  ;;  %871 = vmatprep.mubr.f32.mxu1 %v1452_v10 }
  0xfa   :  { %1122 = vmatprep.subr.mxu1 %v1766_v35 }
  0xfb   :  { %1124 = vmatpush1.msra.mxu1 %v1759_v3  ;;  %741 = vmatmul.mubr.f32.gmra.mxu0 %v1852_v17 }
  0xfc   :  { %875 = vmatmul.mubr.f32.gmra.mxu1 %v2198_v33  ;;  %746 = vmatprep.mubr.f32.mxu0 %v1452_v10 }
  0xfd   :  { %880 = vmatprep.mubr.f32.mxu1 %v1452_v10 }
  0xff   :  { %749 = vmatmul.mubr.f32.gmra.mxu0 %v1868_v9 }
 0x100   :  { %884 = vmatmul.mubr.f32.gmra.mxu1 %v362_v4  ;;  %1020 = vmatprep.mubr.f32.mxu0 %v1452_v10 }
 0x101   :  { %889 = vmatprep.mubr.f32.mxu1 %v1452_v10 }
 0x103   :  { %1022 = vmatmul.mubr.f32.vlgmr.msra.gmra.mxu0 %v1599_v18 }
 0x104   :  { %893 = vmatmul.mubr.f32.gmra.mxu1 %v373_v19  ;;  %1027 = vmatprep.mubr.f32.mxu0 %v1452_v10 }
 0x105   :  { %898 = vmatprep.mubr.f32.mxu1 %v1452_v10 }
 0x107   :  { %1029 = vmatmul.mubr.f32.gmra.mxu0 %v1693_v48 }
 0x108   :  { %902 = vmatmul.mubr.f32.gmra.mxu1 %v384_v26  ;;  %1034 = vmatprep.mubr.f32.mxu0 %v1452_v10 }
 0x109   :  { %1157 = vmatprep.mubr.f32.mxu1 %v1452_v10 }
 0x10b   :  { %1036 = vmatmul.mubr.f32.gmra.mxu0 %v1710_v24 }
 0x10c   :  { %1159 = vmatmul.mubr.f32.vlgmr.msra.gmra.mxu1 %v1599_v18  ;;  %1041 = vmatprep.mubr.f32.mxu0 %v1452_v10 }
 0x10d   :  { %1164 = vmatprep.mubr.f32.mxu1 %v1452_v10 }
 0x10f   :  { %1043 = vmatmul.mubr.f32.gmra.mxu0 %v1753_v13 }
 0x110   :  { %1166 = vmatmul.mubr.f32.gmra.mxu1 %v1693_v48  ;;  %1048 = vmatprep.mubr.f32.mxu0 %v1452_v10 }
 0x111   :  { %1171 = vmatprep.mubr.f32.mxu1 %v1452_v10 }
 0x113   :  { %1050 = vmatmul.mubr.f32.gmra.mxu0 %v1797_v25 }
 0x114   :  { %1173 = vmatmul.mubr.f32.gmra.mxu1 %v1710_v24  ;;  %1055 = vmatprep.mubr.f32.mxu0 %v1452_v10 }
 0x115   :  { %1178 = vmatprep.mubr.f32.mxu1 %v1452_v10 }
 0x117   :  { %1057 = vmatmul.mubr.f32.gmra.mxu0 %v1818_v46 }
 0x118   :  { %1180 = vmatmul.mubr.f32.gmra.mxu1 %v1753_v13  ;;  %1062 = vmatprep.mubr.f32.mxu0 %v1452_v10 }
 0x119   :  { %1185 = vmatprep.mubr.f32.mxu1 %v1452_v10 }
 0x11b   :  { %1064 = vmatmul.mubr.f32.gmra.mxu0 %v1836_v11 }
 0x11c   :  { %1187 = vmatmul.mubr.f32.gmra.mxu1 %v1797_v25  ;;  %1069 = vmatprep.mubr.f32.mxu0 %v1452_v10 }
 0x11d   :  { %1192 = vmatprep.mubr.f32.mxu1 %v1452_v10 }
 0x11f   :  { %1071 = vmatmul.mubr.f32.gmra.mxu0 %v1854_v58 }
 0x120   :  { %1194 = vmatmul.mubr.f32.gmra.mxu1 %v1818_v46 }
 0x121   :  { %1199 = vmatprep.mubr.f32.mxu1 %v1452_v10 }
 0x124   :  { %1201 = vmatmul.mubr.f32.gmra.mxu1 %v1836_v11 }
 0x125   :  { %1206 = vmatprep.mubr.f32.mxu1 %v1452_v10  ;;  %v177_v10 = vpop.permute.xlu1 %176 }
 0x128   :  { %1208 = vmatmul.mubr.f32.gmra.mxu1 %v1854_v58 }
 0x129   :  { %v2040_v45 = vpop.permute.xlu1 %184 }
 0x17b   :  { %v311_v18 = vpop.f32.mrf.mxu0 }
 0x17c   :  { %v312_v44 = vadd.f32 %v311_v18, %v169_v40 }
 0x17d   :  { %v313_v36 = vpop.f32.mrf.mxu0 }
 0x17e   :  { %v314_v2 = vadd.f32 %v313_v36, %v169_v40 }
 0x17f   :  { %v322_v42 = vpop.f32.mrf.mxu0 }
 0x180   :  { %v323_v48 = vadd.f32 %v322_v42, %v173_v59 }
 0x181   :  { %v324_v49 = vpop.f32.mrf.mxu0 }
 0x182   :  { %v325_v21 = vadd.f32 %v324_v49, %v173_v59 }
 0x183   :  { %v333_v61 = vpop.f32.mrf.mxu0  ;;  %v540_v1 = vpop.f32.mrf.mxu1 }
 0x184   :  { %v2026_v25 = vadd.f32 %v540_v1, %v312_v44  ;;  %v334_v39 = vadd.f32 %v333_v61, %v177_v10 }
 0x185   :  { %v335_v46 = vpop.f32.mrf.mxu0  ;;  %v542_v16 = vpop.f32.mrf.mxu1 }
 0x186   :  { %v2028_v43 = vadd.f32 %v542_v16, %v314_v2  ;;  %v336_v55 = vadd.f32 %v335_v46, %v177_v10 }
 0x189   :  { %v344_v14 = vpop.f32.mrf.mxu0  ;;  %v547_v7 = vpop.f32.mrf.mxu1 }
 0x18a   :  { %v2030_v24 = vadd.f32 %v547_v7, %v323_v48  ;;  %v345_v50 = vadd.f32 %v344_v14, %v181_v30 }
 0x18b   :  { %v346_v31 = vpop.f32.mrf.mxu0  ;;  %v549_v20 = vpop.f32.mrf.mxu1 }
 0x18c   :  { %v2032_v23 = vadd.f32 %v549_v20, %v325_v21  ;;  %v347_v6 = vadd.f32 %v346_v31, %v181_v30 }
 0x18f   :  { %v355_v47 = vpop.f32.mrf.mxu0  ;;  %v554_v63 = vpop.f32.mrf.mxu1 }
 0x190   :  { %v2034_v13 = vadd.f32 %v554_v63, %v334_v39  ;;  %v356_v17 = vadd.f32 %v355_v47, %v2040_v45 }
 0x191   :  { %v2036_v3 = vpop.f32.mrf.mxu0  ;;  %v556_v35 = vpop.f32.mrf.mxu1 }
 0x192   :  { %v2038_v5 = vadd.f32 %v556_v35, %v336_v55 }
 0x193   :  { %v2042_v8 = vpop.f32.mrf.mxu0 }
 0x194   :  { %v561_v9 = vpop.f32.mrf.mxu1 }
 0x195   :  { %v2044_v11 = vadd.f32 %v561_v9, %v345_v50  ;;  %v2046_v4 = vpop.f32.mrf.mxu0 }
 0x196   :  { %v563_v58 = vpop.f32.mrf.mxu1 }
 0x197   :  { %v2049_v19 = vadd.f32 %v563_v58, %v347_v6  ;;  %v2051_v62 = vpop.f32.mrf.mxu0 }
 0x198   :  { %v568_v60 = vpop.f32.mrf.mxu1 }
 0x199   :  { %v2053_v26 = vadd.f32 %v568_v60, %v356_v17  ;;  %v2055_v28 = vpop.f32.mrf.mxu0 }
 0x19a   :  { %v2057_v32 = vpop.f32.mrf.mxu1 }
 0x19b   :  { %v2059_v54 = vpop.f32.mrf.mxu0 }
 0x19c   :  { %v2061_v0 = vpop.f32.mrf.mxu1 }
 0x19d   :  { %v2063_v52 = vpop.f32.mrf.mxu0 }
 0x19e   :  { %v2065_v53 = vpop.f32.mrf.mxu1 }
 0x19f   :  { %v694_v56 = vpop.f32.mrf.mxu0 }
 0x1a0   :  { %v2067_v57 = vpop.f32.mrf.mxu1  ;;  %v695_v35 = vadd.f32 %v694_v56, %v2026_v25 }
 0x1a1   :  { %v696_v29 = vpop.f32.mrf.mxu0 }
 0x1a2   :  { %v2069_v34 = vpop.f32.mrf.mxu1  ;;  %v697_v6 = vadd.f32 %v696_v29, %v2028_v43 }
 0x1a3   :  { %v702_v37 = vpop.f32.mrf.mxu0 }
 0x1a4   :  { %v2071_v38 = vpop.f32.mrf.mxu1  ;;  %v703_v12 = vadd.f32 %v702_v37, %v2030_v24  ;;  %v189_v37 = vpop.permute.xlu0 %188 }
 0x1a5   :  { %v704_v51 = vpop.f32.mrf.mxu0 }
 0x1a6   :  { %v2073_v22 = vpop.f32.mrf.mxu1 }
 0x1a7   :  { %2199 = vst [vmem:[#allocation7_spill] sm:$0xff] %v2073_v22  ;;  %v710_v15 = vpop.f32.mrf.mxu0  ;;  %v705_v22 = vadd.f32 %v704_v51, %v2032_v23 }
 0x1a8   :  { %v840_v41 = vpop.f32.mrf.mxu1 }
 0x1a9   :  { %v712_v27 = vpop.f32.mrf.mxu0  ;;  %v841_v17 = vadd.f32 %v840_v41, %v695_v35 }
 0x1aa   :  { %v842_v33 = vpop.f32.mrf.mxu1 }
 0x1ad   :  { %v718_v18 = vpop.f32.mrf.mxu0 }
 0x1ae   :  { %v849_v36 = vpop.f32.mrf.mxu1 }
 0x1af   :  { %v2075_v40 = vpop.f32.mrf.mxu0 }
 0x1b0   :  { %v851_v42 = vpop.f32.mrf.mxu1 }
 0x1b1   :  { %v852_v43 = vadd.f32 %v851_v42, %v705_v22 }
 0x1b3   :  { %v2077_v44 = vpop.f32.mrf.mxu0  ;;  %v858_v49 = vpop.f32.mrf.mxu1 }
 0x1b5   :  { %v2079_v59 = vpop.f32.mrf.mxu0  ;;  %v860_v61 = vpop.f32.mrf.mxu1 }
 0x1b7   :  { %v2081_v1 = vpop.f32.mrf.mxu0 }
 0x1b8   :  { %v867_v2 = vpop.f32.mrf.mxu1 }
 0x1b9   :  { %v2083_v46 = vpop.f32.mrf.mxu0 }
 0x1ba   :  { %v2085_v16 = vpop.f32.mrf.mxu1 }
 0x1bb   :  { %v2087_v48 = vpop.f32.mrf.mxu0 }
 0x1bc   :  { %2200 = vst [vmem:[#allocation8_spill] sm:$0xff] %v2087_v48  ;;  %v2089_v10 = vpop.f32.mrf.mxu1 }
 0x1bd   :  { %v2091_v14 = vpop.f32.mrf.mxu0 }
 0x1be   :  { %2201 = vst [vmem:[#allocation9_spill] sm:$0xff] %v2091_v14  ;;  %v2093_v7 = vpop.f32.mrf.mxu1 }
 0x1bf   :  { %v2095_v21 = vpop.f32.mrf.mxu0 }
 0x1c0   :  { %2202 = vst [vmem:[#allocation10_spill] sm:$0xff] %v2095_v21  ;;  %v2097_v31 = vpop.f32.mrf.mxu1 }
 0x1c1   :  { %v2099_v20 = vpop.f32.mrf.mxu0 }
 0x1c2   :  { %2203 = vst [vmem:[#allocation11_spill] sm:$0xff] %v2099_v20  ;;  %v2101_v39 = vpop.f32.mrf.mxu1  ;;  %v843_v20 = vadd.f32 %v842_v33, %v697_v6 }
 0x1c3   :  { %2204 = vst [vmem:[#allocation12_spill] sm:$0xff] %v2101_v39  ;;  %v1023_v30 = vpop.f32.mrf.mxu0 }
 0x1c4   :  { %v2103_v47 = vpop.f32.mrf.mxu1  ;;  %v1024_v21 = vadd.f32 %v1023_v30, %v841_v17 }
 0x1c5   :  { %2205 = vst [vmem:[#allocation13_spill] sm:$0xff] %v2103_v47  ;;  %v1025_v63 = vpop.f32.mrf.mxu0 }
 0x1c6   :  { %v2105_v55 = vpop.f32.mrf.mxu1  ;;  %v1026_v39 = vadd.f32 %v1025_v63, %v843_v20 }
 0x1c7   :  { %2206 = vst [vmem:[#allocation14_spill] sm:$0xff] %v2105_v55  ;;  %v1030_v50 = vpop.f32.mrf.mxu0  ;;  %v850_v55 = vadd.f32 %v849_v36, %v703_v12  ;;  %v719_v12 = vadd.f32 %v718_v18, %v2044_v11 }
 0x1c8   :  { %v2108_v9 = vpop.f32.mrf.mxu1 }
 0x1c9   :  { %2207 = vst [vmem:[#allocation15_spill] sm:$0xff] %v2108_v9  ;;  %v1032_v58 = vpop.f32.mrf.mxu0  ;;  %v711_v9 = vadd.f32 %v710_v15, %v2034_v13  ;;  %v1031_v29 = vadd.f32 %v1030_v50, %v850_v55  ;;  %v358_v15 = vadd.f32 %v2036_v3, %v2040_v45 }
 0x1ca   :  { %v2111_v60 = vpop.f32.mrf.mxu1  ;;  %v1033_v30 = vadd.f32 %v1032_v58, %v852_v43 }
 0x1cb   :  { %2208 = vst [vmem:[#allocation16_spill] sm:$0xff] %v2111_v60  ;;  %v1037_v14 = vpop.f32.mrf.mxu0  ;;  %v713_v60 = vadd.f32 %v712_v27, %v2038_v5  ;;  %v859_v33 = vadd.f32 %v858_v49, %v711_v9  ;;  %v367_v5 = vadd.f32 %v2042_v8, %v189_v37  ;;  %v721_v27 = vadd.f32 %v2075_v40, %v2049_v19  ;;  %v193_v49 = vpop.permute.xlu1 %192 }
 0x1cc   :  { %v1160_v47 = vpop.f32.mrf.mxu1  ;;  %v369_v40 = vadd.f32 %v2046_v4, %v189_v37  ;;  %v378_v63 = vadd.f32 %v2051_v62, %v193_v49 }
 0x1cd   :  { %v1161_v25 = vadd.f32 %v1160_v47, %v1024_v21  ;;  %v1039_v56 = vpop.f32.mrf.mxu0  ;;  %v861_v36 = vadd.f32 %v860_v61, %v713_v60  ;;  %v1038_v21 = vadd.f32 %v1037_v14, %v859_v33  ;;  %v571_v61 = vadd.f32 %v2057_v32, %v358_v15  ;;  %v197_v47 = vpop.permute.xlu0 %196 }
 0x1ce   :  { %v1162_v48 = vpop.f32.mrf.mxu1  ;;  %v727_v14 = vadd.f32 %v2077_v44, %v2053_v26  ;;  %v870_v3 = vadd.f32 %v2085_v16, %v721_v27  ;;  %v578_v16 = vadd.f32 %v2065_v53, %v369_v40  ;;  %v389_v17 = vadd.f32 %v2059_v54, %v197_v47 }
 0x1cf   :  { %v1163_v41 = vadd.f32 %v1162_v48, %v1026_v39  ;;  %v1044_v35 = vpop.f32.mrf.mxu0  ;;  %1396 = vtanh.f32 %v1161_v25  ;;  %v868_v48 = vadd.f32 %v867_v2, %v719_v12  ;;  %v1040_v20 = vadd.f32 %v1039_v56, %v861_v36  ;;  %v1232_v43 = vpop.permute.xlu1 %1231  ;;  %v2211_v36 = vld [vmem:[#allocation7_spill] sm:$0xff] }
 0x1d0   :  { %v1167_v24 = vpop.f32.mrf.mxu1  ;;  %v576_v2 = vadd.f32 %v2061_v0, %v367_v5  ;;  %v729_v55 = vadd.f32 %v2079_v59, %v571_v61  ;;  %v877_v50 = vadd.f32 %v2089_v10, %v727_v14  ;;  %v380_v25 = vadd.f32 %v2055_v28, %v193_v49  ;;  %v2209_v28 = vld [vmem:[#allocation8_spill] sm:$0xff] }
 0x1d1   :  { %v1168_v6 = vadd.f32 %v1167_v24, %v1031_v29  ;;  %v1046_v23 = vpop.f32.mrf.mxu0  ;;  %1398 = vtanh.f32 %v1163_v41  ;;  %v1045_v45 = vadd.f32 %v1044_v35, %v868_v48  ;;  %v583_v10 = vadd.f32 %v2067_v57, %v378_v63 }
 0x1d2   :  { %v1169_v51 = vpop.f32.mrf.mxu1  ;;  %v1047_v26 = vadd.f32 %v1046_v23, %v870_v3  ;;  %v735_v58 = vadd.f32 %v2081_v1, %v576_v2  ;;  %v879_v0 = vadd.f32 %v2093_v7, %v729_v55  ;;  %v737_v56 = vadd.f32 %v2083_v46, %v578_v16  ;;  %v2216_v2 = vld [vmem:[#allocation11_spill] sm:$0xff] }
 0x1d3   :  { %1400 = vtanh.f32 %v1168_v6  ;;  %v1170_v13 = vadd.f32 %v1169_v51, %v1033_v30  ;;  %v1051_v22 = vpop.f32.mrf.mxu0  ;;  %v585_v7 = vadd.f32 %v2069_v34, %v380_v25  ;;  %v391_v24 = vadd.f32 %v2063_v52, %v197_v47  ;;  %v1236_v30 = vpop.permute.xlu0 %1235  ;;  %v2210_v6 = vld [vmem:[#allocation12_spill] sm:$0xff]  ;;  %v2213_v34 = vld [vmem:[#allocation10_spill] sm:$0xff]  ;;  %v2214_v52 = vld [vmem:[#allocation13_spill] sm:$0xff] }
 0x1d4   :  { %v1174_v42 = vpop.f32.mrf.mxu1  ;;  %v1052_v60 = vadd.f32 %v1051_v22, %v877_v50  ;;  %v886_v53 = vadd.f32 %v2097_v31, %v735_v58  ;;  %v590_v37 = vadd.f32 %v2071_v38, %v389_v17  ;;  %v743_v33 = vadd.f32 %v2209_v28, %v583_v10  ;;  %v1240_v47 = vpop.permute.xlu1 %1239  ;;  %v2217_v55 = vld [vmem:[#allocation15_spill] sm:$0xff] }
 0x1d5   :  { %1402 = vtanh.f32 %v1170_v13  ;;  %v1175_v11 = vadd.f32 %v1174_v42, %v1038_v21  ;;  %v1053_v18 = vpop.f32.mrf.mxu0  ;;  %v888_v23 = vadd.f32 %v2210_v6, %v737_v56  ;;  %v592_v21 = vadd.f32 %v2211_v36, %v391_v24  ;;  %v2212_v13 = vld [vmem:[#allocation9_spill] sm:$0xff] }
 0x1d6   :  { %v1176_v39 = vpop.f32.mrf.mxu1  ;;  %v1054_v54 = vadd.f32 %v1053_v18, %v879_v0  ;;  %v745_v22 = vadd.f32 %v2212_v13, %v585_v7  ;;  %v751_v15 = vadd.f32 %v2213_v34, %v590_v37  ;;  %v895_v5 = vadd.f32 %v2214_v52, %v743_v33  ;;  %v2215_v18 = vld [vmem:[#allocation14_spill] sm:$0xff] }
 0x1d7   :  { %1404 = vtanh.f32 %v1175_v11  ;;  %v1177_v8 = vadd.f32 %v1176_v39, %v1040_v20  ;;  %v1058_v19 = vpop.f32.mrf.mxu0  ;;  %v753_v63 = vadd.f32 %v2216_v2, %v592_v21 }
 0x1d8   :  { %v1181_v32 = vpop.f32.mrf.mxu1  ;;  %v1059_v12 = vadd.f32 %v1058_v19, %v886_v53  ;;  %v897_v61 = vadd.f32 %v2215_v18, %v745_v22 }
 0x1d9   :  { %1406 = vtanh.f32 %v1177_v8  ;;  %v1182_v44 = vadd.f32 %v1181_v32, %v1045_v45  ;;  %v1060_v9 = vpop.f32.mrf.mxu0  ;;  %v904_v32 = vadd.f32 %v2217_v55, %v751_v15  ;;  %v1455_v55 = vmov 1966171168  }
 0x1da   :  { %v1183_v4 = vpop.f32.mrf.mxu1  ;;  %v1061_v27 = vadd.f32 %v1060_v9, %v888_v23 }
 0x1db   :  { %1408 = vtanh.f32 %v1182_v44  ;;  %v1184_v62 = vadd.f32 %v1183_v4, %v1047_v26  ;;  %v1065_v59 = vpop.f32.mrf.mxu0  ;;  %v2218_v4 = vld [vmem:[#allocation16_spill] sm:$0xff] }
 0x1dc   :  { %v1188_v29 = vpop.f32.mrf.mxu1  ;;  %v1397_v35 = vpop.eup %1396  ;;  %v1066_v39 = vadd.f32 %v1065_v59, %v895_v5  ;;  %v906_v0 = vadd.f32 %v2218_v4, %v753_v63 }
 0x1dd   :  { %1410 = vtanh.f32 %v1184_v62  ;;  %v1189_v1 = vadd.f32 %v1188_v29, %v1052_v60  ;;  %v1067_v41 = vpop.f32.mrf.mxu0  ;;  %v1262_v42 = vmul.f32 %v1397_v35, %v1232_v43  ;;  %v1244_v29 = vpop.permute.xlu1 %1243 }
 0x1de   :  { %v1190_v57 = vpop.f32.mrf.mxu1  ;;  %v1399_v46 = vpop.eup %1398  ;;  %v1068_v50 = vadd.f32 %v1067_v41, %v897_v61 }
 0x1df   :  { %1412 = vtanh.f32 %v1189_v1  ;;  %v1191_v31 = vadd.f32 %v1190_v57, %v1054_v54  ;;  %v1072_v48 = vpop.f32.mrf.mxu0  ;;  %v1263_v14 = vmul.f32 %v1399_v46, %v1232_v43  ;;  %v1248_v57 = vpop.permute.xlu0 %1247 }
 0x1e0   :  { %v1401_v51 = vpop.eup %1400  ;;  %v1195_v38 = vpop.f32.mrf.mxu1  ;;  %v1073_v60 = vadd.f32 %v1072_v48, %v904_v32  ;;  %v1312_v32 = vunpack.c.l.s4 %v1455_v55 }
 0x1e1   :  { %v1264_v49 = vmul.f32 %v1401_v51, %v1236_v30  ;;  %v1196_v20 = vadd.f32 %v1195_v38, %v1059_v12  ;;  %1414 = vtanh.f32 %v1191_v31  ;;  %v1074_v16 = vpop.f32.mrf.mxu0  ;;  %v1252_v51 = vpop.permute.xlu1 %1251 }
 0x1e2   :  { %v1403_v11 = vpop.eup %1402  ;;  %v1197_v3 = vpop.f32.mrf.mxu1  ;;  %v1075_v43 = vadd.f32 %v1074_v16, %v906_v0  ;;  %v1313_v16 = vunpack.c.0.s8 %v1312_v32 }
 0x1e3   :  { %v1265_v45 = vmul.f32 %v1403_v11, %v1236_v30  ;;  %v1278_v8 = vadd.f32 %v1264_v49, %v1262_v42  ;;  %1416 = vtanh.f32 %v1196_v20  ;;  %v1198_v19 = vadd.f32 %v1197_v3, %v1061_v27  ;;  %v1256_v22 = vpop.permute.xlu0 %1255 }
 0x1e4   :  { %v1405_v40 = vpop.eup %1404  ;;  %v1202_v26 = vpop.f32.mrf.mxu1 }
 0x1e5   :  { %v1266_v44 = vmul.f32 %v1405_v40, %v1240_v47  ;;  %v1291_v9 = vadd.f32 %v1265_v45, %v1263_v14  ;;  %1418 = vtanh.f32 %v1198_v19  ;;  %v1203_v17 = vadd.f32 %v1202_v26, %v1066_v39  ;;  %v1260_v49 = vpop.permute.xlu1 %1259 }
 0x1e6   :  { %v1407_v58 = vpop.eup %1406  ;;  %v1204_v62 = vpop.f32.mrf.mxu1 }
 0x1e7   :  { %v1267_v59 = vmul.f32 %v1407_v58, %v1240_v47  ;;  %v1279_v25 = vadd.f32 %v1278_v8, %v1266_v44  ;;  %1420 = vtanh.f32 %v1203_v17  ;;  %v1205_v10 = vadd.f32 %v1204_v62, %v1068_v50 }
 0x1e8   :  { %v1409_v56 = vpop.eup %1408  ;;  %v1209_v53 = vpop.f32.mrf.mxu1  ;;  %v1305_v17 = vstv %s2164_s3 }
 0x1e9   :  { %v1268_v54 = vmul.f32 %v1409_v56, %v1244_v29  ;;  %v1292_v1 = vadd.f32 %v1291_v9, %v1267_v59  ;;  %1422 = vtanh.f32 %v1205_v10  ;;  %v1210_v41 = vadd.f32 %v1209_v53, %v1073_v60  ;;  %v2219_v60 = vld [vmem:[#allocation6_spill] sm:$0xff] }
 0x1ea   :  { %v1411_v35 = vpop.eup %1410  ;;  %v1211_v7 = vpop.f32.mrf.mxu1  ;;  %v1316_v62 = vsub.s32 %v1313_v16, %v2219_v60  ;;  %v2220_v10 = vlaneseq }
 0x1eb   :  { %v1269_v24 = vmul.f32 %v1411_v35, %v1244_v29  ;;  %v1280_v37 = vadd.f32 %v1279_v25, %v1268_v54  ;;  %1424 = vtanh.f32 %v1210_v41  ;;  %v1212_v28 = vadd.f32 %v1211_v7, %v1075_v43 }
 0x1ec   :  { %v1413_v33 = vpop.eup %1412  ;;  %vm1328_vm1 = vcmp.lt.s32.totalorder %v2220_v10, 256 }
 0x1ed   :  { %v1293_v30 = vadd.f32 %v1292_v1, %v1269_v24  ;;  %1426 = vtanh.f32 %v1212_v28  ;;  %v1270_v46 = vmul.f32 %v1413_v33, %v1248_v57 }
 0x1ee   :  { %v1415_v6 = vpop.eup %1414 }
 0x1ef   :  { %v1281_v23 = vadd.f32 %v1280_v37, %v1270_v46  ;;  %v1271_v21 = vmul.f32 %v1415_v6, %v1248_v57 }
 0x1f0   :  { %v1417_v12 = vpop.eup %1416 }
 0x1f1   :  { %v1272_v36 = vmul.f32 %v1417_v12, %v1252_v51  ;;  %v1294_v5 = vadd.f32 %v1293_v30, %v1271_v21 }
 0x1f2   :  { %v1419_v31 = vpop.eup %1418 }
 0x1f3   :  { %v1273_v34 = vmul.f32 %v1419_v31, %v1252_v51  ;;  %v1282_v27 = vadd.f32 %v1281_v23, %v1272_v36 }
 0x1f4   :  { %v1421_v13 = vpop.eup %1420 }
 0x1f5   :  { %v1274_v15 = vmul.f32 %v1421_v13, %v1256_v22  ;;  %v1295_v11 = vadd.f32 %v1294_v5, %v1273_v34 }
 0x1f6   :  { %v1423_v52 = vpop.eup %1422 }
 0x1f7   :  { %v1275_v38 = vmul.f32 %v1423_v52, %v1256_v22  ;;  %v1283_v20 = vadd.f32 %v1282_v27, %v1274_v15 }
 0x1f8   :  { %v1425_v42 = vpop.eup %1424 }
 0x1f9   :  { %v1276_v48 = vmul.f32 %v1425_v42, %v1260_v49  ;;  %v1296_v39 = vadd.f32 %v1295_v11, %v1275_v38 }
 0x1fa   :  { %v1427_v18 = vpop.eup %1426 }
 0x1fb   :  { %v1277_v61 = vmul.f32 %v1427_v18, %v1260_v49  ;;  %v1284_v14 = vadd.f32 %v1283_v20, %v1276_v48 }
 0x1fd   :  { %v1285_v47 = vrot.slane %v1284_v14, 4  ;;  %v1297_v3 = vadd.f32 %v1296_v39, %v1277_v61 }
 0x1ff   :  { %v1286_v45 = vadd.f32 %v1285_v47, %v1284_v14  ;;  %v1298_v8 = vrot.slane %v1297_v3, 4 }
 0x201   :  { %v1287_v19 = vrot.slane %v1286_v45, 2  ;;  %v1299_v40 = vadd.f32 %v1298_v8, %v1297_v3 }
 0x203   :  { %v1288_v2 = vadd.f32 %v1287_v19, %v1286_v45  ;;  %v1300_v63 = vrot.slane %v1299_v40, 2 }
 0x205   :  { %v1289_v50 = vrot.slane %v1288_v2, 1  ;;  %v1301_v26 = vadd.f32 %v1300_v63, %v1299_v40 }
 0x207   :  { %v1290_v44 = vadd.f32 %v1289_v50, %v1288_v2  ;;  %v1302_v9 = vrot.slane %v1301_v26, 1 }
 0x209   :  { %v1303_v58 = vadd.f32 %v1302_v9, %v1301_v26  ;;  %v1306_v4 = vadd.f32 %v1305_v17, %v1290_v44 }
 0x20b   :  { %v1307_v0 = vadd.f32 %v1305_v17, %v1303_v58 }
 0x20d   :  { %v1310_v59 = vcombine.low %v1306_v4, %v1307_v0 }
 0x20f   :  { %v1317_v25 = vrot.slane %v1310_v59, %v1316_v62 }
 0x211   :  { %v1324_v56 = vrot.slane %v1317_v25, %v1316_v62 }
 0x213   :  { %1330 = vst.msk [vmem:[#allocation3] sm:$0x3] %vm1328_vm1, %v1324_v56 }
 0x214   :  { %1439 = shalt.err (!%p1436_p4)
}
 0x215   :  { %1340 = dma.vmem_to_hbm [thread:$0]  %s1338_s23, 32, %s2165_s4, [#allocation4]  }
 0x216   :  { %1448 = dma.done.wait [#allocation4], 32  }
 0x217   :  { %1449 = vsyncadd [#allocation4], 4294967264 }
 0x218   :  { %1344 = vsyncpa [#allocation4], 1 }

</bundles_post_ra>
